<compile_context>
chip_gen: v7x
topology: tpu7x:2x2x1
jax: 0.10.0
libtpu: 0.0.40
codegen_flags: <defaults>
</compile_context>

<pallas_src>
import math

import jax
import jax.numpy as jnp
from jax import lax
from jax.experimental import pallas as pl
from jax.experimental.pallas import tpu as pltpu

BN_EPS = 1e-5
NEG_SLOPE = 0.01
LANE = 128


def _mlp_kernel(x_ref,
                w1_ref, b1_ref,
                w2_ref, b2_ref,
                w3_ref, b3_ref,
                w4_ref, b4_ref,
                out_ref):
    """One batch tile of the 4-layer MLP.

    x_ref:   (TB, 21)    batch-major input block (as stored in HBM)
    wK_ref:  (outK, inK) BN-folded weight, torch layout
    bK_ref:  (outK, 1)   BN-folded bias
    out_ref: (1, TB)     lane-dense output block (batch on lanes)
    """
    xb = x_ref[...]  # (TB, 21), f32

    # Layer 1: contract the feature axis of both operands so the result is
    # feature-major (15, TB): batch sits on the 128-lane axis from here on.
    h = lax.dot_general(w1_ref[...], xb, (((1,), (1,)), ((), ())),
                        preferred_element_type=jnp.float32)
    h = h + b1_ref[...]
    h = jnp.where(h > 0, h, NEG_SLOPE * h)          # LeakyReLU; Dropout = identity (eval)

    h = jnp.dot(w2_ref[...], h, preferred_element_type=jnp.float32) + b2_ref[...]
    h = jnp.where(h > 0, h, NEG_SLOPE * h)

    h = jnp.dot(w3_ref[...], h, preferred_element_type=jnp.float32) + b3_ref[...]
    h = jnp.where(h > 0, h, NEG_SLOPE * h)

    y = jnp.dot(w4_ref[...], h, preferred_element_type=jnp.float32) + b4_ref[...]
    out_ref[...] = y.astype(out_ref.dtype)          # (1, TB): unmasked lane-dense store


def _fold_bn(params):
    """Fold eval-mode BatchNorm into the preceding Linear (host-side)."""
    folded = []
    for i in (1, 2, 3):
        w = params[f"w{i}"]                                          # (out, in)
        b = params[f"b{i}"]                                          # (out,)
        s = params[f"g{i}"] * lax.rsqrt(params[f"v{i}"] + BN_EPS)    # (out,)
        w_eff = w * s[:, None]
        b_eff = (b - params[f"m{i}"]) * s + params[f"beta{i}"]
        folded.append((w_eff, b_eff[:, None]))
    folded.append((params["w4"], params["b4"][:, None]))
    return folded


def _choose_tile(B, tb):
    """Batch-tile size: large, multiple of 128, grid even (>=2) when possible."""
    if B <= 2 * LANE:
        return B                                    # one block; block dims == array dims
    n = max(2, pl.cdiv(B, tb))                      # >=2 steps so v7x's 2nd TC gets work
    if n % 2:
        n += 1                                      # keep grid even for megacore
    return min(tb, pl.cdiv(B, n * LANE) * LANE)


def model1_forward(x, params, tb=8192):
    """x: (B, 21) float32.  params: torch-layout weights/BN stats (see init_params).

    Returns (B, 1) float32.  `tb` is the batch tile; 8192 is safe on v7x's
    64 MiB VMEM, raise toward 16384 on v5e/v6e.
    """
    B = x.shape[0]
    if x.dtype != jnp.float32:
        x = x.astype(jnp.float32)

    TB = _choose_tile(B, tb)
    grid = (pl.cdiv(B, TB),)

    folded = _fold_bn(params)
    flat_args = [x]
    in_specs = [pl.BlockSpec((TB, 21), lambda i: (i, 0))]
    param_bytes = 0
    for (w, b) in folded:
        flat_args += [w, b]
        # Constant index maps: params are DMA'd once, not re-fetched per step.
        in_specs += [pl.BlockSpec(w.shape, lambda i: (0, 0)),
                     pl.BlockSpec(b.shape, lambda i: (0, 0))]
        param_bytes += (w.size + b.size) * 4

    flops = 2 * B * (21 * 15 + 15 * 10 + 10 * 5 + 5 * 1)
    bytes_accessed = B * 21 * 4 + B * 4 + param_bytes

    # VMEM budget: double-buffered (TB, 21->128) input (+ relayout temp),
    # double-buffered (1->8, TB) output, feature-major f32 intermediates, slack.
    vmem_need = (3 * TB * LANE * 4
                 + 2 * 8 * TB * 4
                 + 64 * TB * 4
                 + (2 << 20))
    vmem_limit = int(min(max(vmem_need, 32 << 20), 64 << 20))

    out = pl.pallas_call(
        _mlp_kernel,
        out_shape=jax.ShapeDtypeStruct((1, B), jnp.float32),
        grid=grid,
        in_specs=in_specs,
        out_specs=pl.BlockSpec((1, TB), lambda i: (0, i)),
        compiler_params=pltpu.CompilerParams(
            dimension_semantics=("parallel",),
            vmem_limit_bytes=vmem_limit),
        cost_estimate=pl.CostEstimate(
            flops=flops, transcendentals=0, bytes_accessed=bytes_accessed),
    )(*flat_args)

    return out.reshape(B, 1)


def init_params(key):
    """Deterministic synthetic parameters in torch layout: W (out, in), b (out,)."""
    dims = [(21, 15), (15, 10), (10, 5), (5, 1)]
    params = {}
    keys = jax.random.split(key, 2 * len(dims))
    ki = 0
    for layer_idx, (fan_in, fan_out) in enumerate(dims, start=1):
        bound = 1.0 / math.sqrt(fan_in)
        params[f"w{layer_idx}"] = jax.random.uniform(
            keys[ki], (fan_out, fan_in), jnp.float32, -bound, bound)
        ki += 1
        params[f"b{layer_idx}"] = jax.random.uniform(
            keys[ki], (fan_out,), jnp.float32, -bound, bound)
        ki += 1
    # BatchNorm params / running stats for the first three layers.
    for layer_idx, width in zip((1, 2, 3), (15, 10, 5)):
        params[f"g{layer_idx}"] = jnp.ones((width,), jnp.float32)
        params[f"beta{layer_idx}"] = jnp.zeros((width,), jnp.float32)
        params[f"m{layer_idx}"] = 0.1 * jnp.arange(width, dtype=jnp.float32)
        params[f"v{layer_idx}"] = 1.0 + 0.05 * jnp.arange(width, dtype=jnp.float32)
    return params


def reference_forward(x, params):
    """Pure-JAX reference using the un-folded BN math (mirrors the torch module)."""
    h = x
    for i in (1, 2, 3):
        y = h @ params[f"w{i}"].T + params[f"b{i}"]
        y = ((y - params[f"m{i}"]) * lax.rsqrt(params[f"v{i}"] + BN_EPS)
             * params[f"g{i}"] + params[f"beta{i}"])
        h = jnp.where(y > 0, y, NEG_SLOPE * y)
    return h @ params["w4"].T + params["b4"]


if __name__ == "__main__":
    key = jax.random.PRNGKey(0)
    k_x, k_x2, k_p = jax.random.split(key, 3)
    params = init_params(k_p)

    # Small single-block case (grid = 1).
    B = 8
    x = jax.random.normal(k_x, (B, 21), jnp.float32)
    out = jax.block_until_ready(model1_forward(x, params))
    ref = reference_forward(x, params)
    assert out.shape == (B, 1), out.shape
    assert jnp.allclose(out, ref, atol=1e-5, rtol=1e-4), (out, ref)

    # Multi-block case with a ragged last tile (grid = 2, masked edge).
    B2 = 300
    x2 = jax.random.normal(k_x2, (B2, 21), jnp.float32)
    out2 = jax.block_until_ready(model1_forward(x2, params))
    ref2 = reference_forward(x2, params)
    assert out2.shape == (B2, 1), out2.shape
    assert jnp.allclose(out2, ref2, atol=1e-5, rtol=1e-4)

    print("KERNEL_OK")
</pallas_src>

<mosaic_0001>
module attributes {stable_mosaic.version = 11 : i64} {
  func.func @_mlp_kernel(%arg0: i32, %arg1: memref<8x21xf32, #tpu.memory_space<vmem>>, %arg2: memref<15x21xf32, #tpu.memory_space<vmem>>, %arg3: memref<15x1xf32, #tpu.memory_space<vmem>>, %arg4: memref<10x15xf32, #tpu.memory_space<vmem>>, %arg5: memref<10x1xf32, #tpu.memory_space<vmem>>, %arg6: memref<5x10xf32, #tpu.memory_space<vmem>>, %arg7: memref<5x1xf32, #tpu.memory_space<vmem>>, %arg8: memref<1x5xf32, #tpu.memory_space<vmem>>, %arg9: memref<1x1xf32, #tpu.memory_space<vmem>>, %arg10: memref<1x8xf32, #tpu.memory_space<vmem>>) attributes {dimension_semantics = [#tpu.dimension_semantics<parallel>], iteration_bounds = array<i64: 1>, scalar_prefetch = 0 : i64, scratch_operands = 0 : i64, tpu.core_type = #tpu.core_type<tc>, window_params = [{transform_indices = @transform_0, window_bounds = array<i64: 8, 21>}, {pipeline_mode = #tpu.pipeline_mode<synchronous>, transform_indices = @transform_1, window_bounds = array<i64: 15, 21>}, {pipeline_mode = #tpu.pipeline_mode<synchronous>, transform_indices = @transform_2, window_bounds = array<i64: 15, 1>}, {pipeline_mode = #tpu.pipeline_mode<synchronous>, transform_indices = @transform_3, window_bounds = array<i64: 10, 15>}, {pipeline_mode = #tpu.pipeline_mode<synchronous>, transform_indices = @transform_4, window_bounds = array<i64: 10, 1>}, {pipeline_mode = #tpu.pipeline_mode<synchronous>, transform_indices = @transform_5, window_bounds = array<i64: 5, 10>}, {pipeline_mode = #tpu.pipeline_mode<synchronous>, transform_indices = @transform_6, window_bounds = array<i64: 5, 1>}, {pipeline_mode = #tpu.pipeline_mode<synchronous>, transform_indices = @transform_7, window_bounds = array<i64: 1, 5>}, {pipeline_mode = #tpu.pipeline_mode<synchronous>, transform_indices = @transform_8, window_bounds = array<i64: 1, 1>}, {transform_indices = @transform_9, window_bounds = array<i64: 1, 8>}]} {
    %c0 = arith.constant 0 : index
    %c0_0 = arith.constant 0 : index
    %0 = vector.load %arg1[%c0, %c0_0] : memref<8x21xf32, #tpu.memory_space<vmem>>, vector<8x21xf32>
    %c0_1 = arith.constant 0 : index
    %c0_2 = arith.constant 0 : index
    %1 = vector.load %arg2[%c0_1, %c0_2] : memref<15x21xf32, #tpu.memory_space<vmem>>, vector<15x21xf32>
    %cst = arith.constant dense<0.000000e+00> : vector<15x8xf32>
    %2 = tpu.matmul %1, %0, %cst {dimension_numbers = #tpu.dot_dimension_numbers<[1], [1], [0], [0], [0, 0, 1, 0], [], []>} : vector<15x21xf32>, vector<8x21xf32>, vector<15x8xf32> -> vector<15x8xf32>
    %c0_3 = arith.constant 0 : index
    %c0_4 = arith.constant 0 : index
    %3 = vector.load %arg3[%c0_3, %c0_4] : memref<15x1xf32, #tpu.memory_space<vmem>>, vector<15x1xf32>
    %4 = vector.broadcast %3 : vector<15x1xf32> to vector<15x8xf32>
    %5 = arith.addf %2, %4 : vector<15x8xf32>
    %cst_5 = arith.constant 0.000000e+00 : f32
    %6 = vector.broadcast %cst_5 : f32 to vector<15x8xf32>
    %7 = arith.cmpf ogt, %5, %6 : vector<15x8xf32>
    %cst_6 = arith.constant 0.00999999977 : f32
    %8 = vector.broadcast %cst_6 : f32 to vector<15x8xf32>
    %9 = arith.mulf %8, %5 : vector<15x8xf32>
    %10 = arith.select %7, %5, %9 : vector<15x8xi1>, vector<15x8xf32>
    %c0_7 = arith.constant 0 : index
    %c0_8 = arith.constant 0 : index
    %11 = vector.load %arg4[%c0_7, %c0_8] : memref<10x15xf32, #tpu.memory_space<vmem>>, vector<10x15xf32>
    %cst_9 = arith.constant dense<0.000000e+00> : vector<10x8xf32>
    %12 = tpu.matmul %11, %10, %cst_9 {dimension_numbers = #tpu.dot_dimension_numbers<[1], [0], [0], [1], [0, 0, 1, 1], [], []>} : vector<10x15xf32>, vector<15x8xf32>, vector<10x8xf32> -> vector<10x8xf32>
    %c0_10 = arith.constant 0 : index
    %c0_11 = arith.constant 0 : index
    %13 = vector.load %arg5[%c0_10, %c0_11] : memref<10x1xf32, #tpu.memory_space<vmem>>, vector<10x1xf32>
    %14 = vector.broadcast %13 : vector<10x1xf32> to vector<10x8xf32>
    %15 = arith.addf %12, %14 : vector<10x8xf32>
    %cst_12 = arith.constant 0.000000e+00 : f32
    %16 = vector.broadcast %cst_12 : f32 to vector<10x8xf32>
    %17 = arith.cmpf ogt, %15, %16 : vector<10x8xf32>
    %cst_13 = arith.constant 0.00999999977 : f32
    %18 = vector.broadcast %cst_13 : f32 to vector<10x8xf32>
    %19 = arith.mulf %18, %15 : vector<10x8xf32>
    %20 = arith.select %17, %15, %19 : vector<10x8xi1>, vector<10x8xf32>
    %c0_14 = arith.constant 0 : index
    %c0_15 = arith.constant 0 : index
    %21 = vector.load %arg6[%c0_14, %c0_15] : memref<5x10xf32, #tpu.memory_space<vmem>>, vector<5x10xf32>
    %cst_16 = arith.constant dense<0.000000e+00> : vector<5x8xf32>
    %22 = tpu.matmul %21, %20, %cst_16 {dimension_numbers = #tpu.dot_dimension_numbers<[1], [0], [0], [1], [0, 0, 1, 1], [], []>} : vector<5x10xf32>, vector<10x8xf32>, vector<5x8xf32> -> vector<5x8xf32>
    %c0_17 = arith.constant 0 : index
    %c0_18 = arith.constant 0 : index
    %23 = vector.load %arg7[%c0_17, %c0_18] : memref<5x1xf32, #tpu.memory_space<vmem>>, vector<5x1xf32>
    %24 = vector.broadcast %23 : vector<5x1xf32> to vector<5x8xf32>
    %25 = arith.addf %22, %24 : vector<5x8xf32>
    %cst_19 = arith.constant 0.000000e+00 : f32
    %26 = vector.broadcast %cst_19 : f32 to vector<5x8xf32>
    %27 = arith.cmpf ogt, %25, %26 : vector<5x8xf32>
    %cst_20 = arith.constant 0.00999999977 : f32
    %28 = vector.broadcast %cst_20 : f32 to vector<5x8xf32>
    %29 = arith.mulf %28, %25 : vector<5x8xf32>
    %30 = arith.select %27, %25, %29 : vector<5x8xi1>, vector<5x8xf32>
    %c0_21 = arith.constant 0 : index
    %c0_22 = arith.constant 0 : index
    %31 = vector.load %arg8[%c0_21, %c0_22] : memref<1x5xf32, #tpu.memory_space<vmem>>, vector<1x5xf32>
    %cst_23 = arith.constant dense<0.000000e+00> : vector<1x8xf32>
    %32 = tpu.matmul %31, %30, %cst_23 {dimension_numbers = #tpu.dot_dimension_numbers<[1], [0], [0], [1], [0, 0, 1, 1], [], []>} : vector<1x5xf32>, vector<5x8xf32>, vector<1x8xf32> -> vector<1x8xf32>
    %c0_24 = arith.constant 0 : index
    %c0_25 = arith.constant 0 : index
    %33 = vector.load %arg9[%c0_24, %c0_25] : memref<1x1xf32, #tpu.memory_space<vmem>>, vector<1x1xf32>
    %34 = vector.broadcast %33 : vector<1x1xf32> to vector<1x8xf32>
    %35 = arith.addf %32, %34 : vector<1x8xf32>
    %c0_26 = arith.constant 0 : index
    %c0_27 = arith.constant 0 : index
    %36 = vector.load %arg10[%c0_26, %c0_27] : memref<1x8xf32, #tpu.memory_space<vmem>>, vector<1x8xf32>
    tpu.vector_store %arg10[%c0_26, %c0_27], %35 {strides = array<i32>} : memref<1x8xf32, #tpu.memory_space<vmem>>, vector<1x8xf32>,
    return
  }
  func.func @transform_0(%arg0: i32) -> (i32, i32) {
    %c0_i32 = arith.constant 0 : i32
    %c0_i32_0 = arith.constant 0 : i32
    return %arg0, %c0_i32 : i32, i32
  }
  func.func @transform_1(%arg0: i32) -> (i32, i32) {
    %c0_i32 = arith.constant 0 : i32
    %c0_i32_0 = arith.constant 0 : i32
    %c0_i32_1 = arith.constant 0 : i32
    return %c0_i32, %c0_i32_0 : i32, i32
  }
  func.func @transform_2(%arg0: i32) -> (i32, i32) {
    %c0_i32 = arith.constant 0 : i32
    %c0_i32_0 = arith.constant 0 : i32
    %c0_i32_1 = arith.constant 0 : i32
    return %c0_i32, %c0_i32_0 : i32, i32
  }
  func.func @transform_3(%arg0: i32) -> (i32, i32) {
    %c0_i32 = arith.constant 0 : i32
    %c0_i32_0 = arith.constant 0 : i32
    %c0_i32_1 = arith.constant 0 : i32
    return %c0_i32, %c0_i32_0 : i32, i32
  }
  func.func @transform_4(%arg0: i32) -> (i32, i32) {
    %c0_i32 = arith.constant 0 : i32
    %c0_i32_0 = arith.constant 0 : i32
    %c0_i32_1 = arith.constant 0 : i32
    return %c0_i32, %c0_i32_0 : i32, i32
  }
  func.func @transform_5(%arg0: i32) -> (i32, i32) {
    %c0_i32 = arith.constant 0 : i32
    %c0_i32_0 = arith.constant 0 : i32
    %c0_i32_1 = arith.constant 0 : i32
    return %c0_i32, %c0_i32_0 : i32, i32
  }
  func.func @transform_6(%arg0: i32) -> (i32, i32) {
    %c0_i32 = arith.constant 0 : i32
    %c0_i32_0 = arith.constant 0 : i32
    %c0_i32_1 = arith.constant 0 : i32
    return %c0_i32, %c0_i32_0 : i32, i32
  }
  func.func @transform_7(%arg0: i32) -> (i32, i32) {
    %c0_i32 = arith.constant 0 : i32
    %c0_i32_0 = arith.constant 0 : i32
    %c0_i32_1 = arith.constant 0 : i32
    return %c0_i32, %c0_i32_0 : i32, i32
  }
  func.func @transform_8(%arg0: i32) -> (i32, i32) {
    %c0_i32 = arith.constant 0 : i32
    %c0_i32_0 = arith.constant 0 : i32
    %c0_i32_1 = arith.constant 0 : i32
    return %c0_i32, %c0_i32_0 : i32, i32
  }
  func.func @transform_9(%arg0: i32) -> (i32, i32) {
    %c0_i32 = arith.constant 0 : i32
    %c0_i32_0 = arith.constant 0 : i32
    return %c0_i32, %arg0 : i32, i32
  }
}

</mosaic_0001>

<bundles_post_ra>
// kernel: tpu_custom_call.1
= control target key start
LH: loop header
LB: loop body
LE: loop exit
PB: predicated region body
PF: predicated region fallthrough
CT: control target
= control target key end

     0   :  { %s639_s0 = inlined_call_operand.vmem [shape: f32[8,21], index: 0, kind: input, shape index: {}]   ;;  %s640_s1 = inlined_call_operand.vmem [shape: f32[15,21], index: 1, kind: input, shape index: {}]   ;;  %s641_s2 = inlined_call_operand.vmem [shape: f32[15,1], index: 2, kind: input, shape index: {}]   ;;  %s642_s3 = inlined_call_operand.vmem [shape: f32[10,15], index: 3, kind: input, shape index: {}]   ;;  %s643_s4 = inlined_call_operand.vmem [shape: f32[10,1], index: 4, kind: input, shape index: {}]   ;;  %s644_s5 = inlined_call_operand.vmem [shape: f32[5,10], index: 5, kind: input, shape index: {}]   ;;  %s645_s6 = inlined_call_operand.vmem [shape: f32[5,1], index: 6, kind: input, shape index: {}]   ;;  %s646_s7 = inlined_call_operand.vmem [shape: f32[1,5], index: 7, kind: input, shape index: {}]   ;;  %s647_s8 = inlined_call_operand.<no memory space> [shape: f32[1,1], index: 8, kind: input, shape index: {}]   ;;  %s648_s9 = inlined_call_operand.hbm [shape: f32[1,8], index: 9, kind: output, shape index: {}]  }
   0x1   :  { %v14_v0 = vstv %s647_s8 }
   0x2   :  { %15 = vst [vmem:[#allocation2] sm:$0x1] %v14_v0 }
   0x3   :  { %v35_v1 = vld [vmem:[%s639_s0] sm:$0xff]  ;;  %vm50_vm0 = vcmask 171008   ;;  %v37_v4 = vld [vmem:[%s640_s1 + $0x8] sm:$0x7f]  ;;  %v528_v5 = vmov 0  }
   0x4   :  { %v36_v2 = vld [vmem:[%s640_s1] sm:$0xff]  ;;  %462 = vmatprep.subr.msk.mxu0 %vm50_vm0, %v35_v1  ;;  %502 = vset.pattern.permute.xlu0 %v528_v5 }
   0x5   :  { %464 = vmatprep.mubr.msk.f32.mxu0 %vm50_vm0, %v36_v2  ;;  %v38_v3 = vld [vmem:[%s641_s2] sm:$0xff]  ;;  %463 = vmatpush3.xpose.msk.msra.mxu0 %vm50_vm0, %v35_v1 }
   0x6   :  { %16 = vsyncpa [#allocation4], 0  ;;  %42 = vperm.xlu0 %502, %v38_v3   ;;  %503 = vset.pattern.permute.xlu1 %v528_v5  ;;  %v39_v6 = vld [vmem:[%s641_s2 + $0x8] sm:$0x7f]  ;;  %v248_v7 = vld [vmem:[%s645_s6] sm:$0x1f]  ;;  %v342_v45 = vlaneseq }
   0x7   :  { %v141_v8 = vld [vmem:[%s642_s3] sm:$0xff]  ;;  %vm155_vm1 = vcmask 121856   ;;  %v144_v10 = vld [vmem:[%s643_s4 + $0x8] sm:$0x3]  ;;  %vm162_vm3 = vcmask 1046528   ;;  %vm529_vm5 = vmmov 1  }
   0x8   :  { %465 = vmatmul.mubr.msk.f32.vlgmr.msra.gmra.mrb[0].mxu0 %vm50_vm0, %v37_v4  ;;  %471 = vmatprep.mubr.msk.f32.mxu1 %vm155_vm1, %v141_v8  ;;  %v143_v9 = vld [vmem:[%s643_s4] sm:$0xff]  ;;  %vm487_vm6 = vmpackc.low %vm162_vm3, %vm529_vm5  ;;  %v142_v23 = vld [vmem:[%s642_s3 + $0x8] sm:$0x3]  ;;  %v530_v24 = vmov 0.0|0.0   ;;  %vm531_vm7 = vmmov 0   ;;  %v532_v25 = vmov 0.0  }
   0x9   :  { %147 = vperm.xlu1 %503, %v143_v9   ;;  %v336_v11 = vld [vmem:[#allocation2] sm:$0x1]  ;;  %492 = vmatprep.subr.bf16.mxu0 %v530_v24  ;;  %vm258_vm8 = vcmask 1041408   ;;  %vm254_vm12 = vcmask 80896   ;;  %vm350_vm14 = vcmask 1044480   ;;  %vm346_vm15 = vcmask 39936  }
   0xa   :  { %47 = vperm.xlu0 %502, %v39_v6   ;;  %478 = vmatprep.mubr.msk.f32.mxu0 %vm531_vm7, %v532_v25  ;;  %vm494_vm11 = vmpackc.low %vm258_vm8, %vm529_vm5  ;;  %v247_v37 = vld [vmem:[%s644_s5] sm:$0x1f]  ;;  %v343_v46 = vshrl.u32 %v342_v45, 7  ;;  %s533_s5 = smov [#allocation3]   ;;  %vm424_vm0 = vcmask 57344  }
   0xb   :  { %v335_v43 = vld [vmem:[%s646_s7] sm:$0x1]  ;;  %s432_s28 = sshll.u32 %s533_s5, 4  ;;  %s433_s28 = int_to_ptr.vmem [resolvable:$true] %s432_s28 }
   0xc   :  { %v344_v47 = vsub.s32 0, %v343_v46  ;;  %s504_s29 = scalar_lea.vmem %s433_s28, 16  ;;  %s508_s7 = scalar_lea.vmem %s433_s28, 32 }
   0xd   :  { %152 = vperm.xlu1 %503, %v144_v10   ;;  %p505_p0 = scmp.ne.s32.totalorder %s433_s28, %s504_s29  ;;  %p509_p1 = scmp.lt.s32.totalorder %s433_s28, %s433_s28 }
   0xe   :  { %251 = vperm.xlu0 %502, %v248_v7   ;;  %p510_p2 = scmp.lt.s32.totalorder %s508_s7, %s504_s29 }
  0x10   :  { %p511_p3 = por %p510_p2, %p509_p1 }
  0x11   :  { %339 = vperm.xlu1 %503, %v336_v11  }
  0x12   :  { %p512_p4 = pnand %p511_p3, %p505_p0 }
  0x85   :  { %v43_v12 = vpop.permute.xlu0 %42 }
  0x88   :  { %v148_v26 = vpop.permute.xlu1 %147 }
  0x89   :  { %v48_v13 = vpop.permute.xlu0 %47 }
  0x8c   :  { %v153_v27 = vpop.permute.xlu1 %152 }
  0x8d   :  { %v252_v38 = vpop.permute.xlu0 %251 }
  0x90   :  { %v340_v48 = vpop.permute.xlu1 %339 }
  0x91   :  { %v345_v49 = vrot.slane %v340_v48, %v344_v47 }
  0xdb   :  { %v466_v14 = vpop.f32.mrb[0].mxu0 }
  0xdc   :  { %v132_v15 = vadd.f32 %v466_v14, %v48_v13  ;;  %v126_v16 = vpop.f32.mrb[1].mxu0 }
  0xdd   :  { %v127_v17 = vadd.f32 %v126_v16, %v43_v12 }
  0xde   :  { %v138_v18 = vmul.f32 0.01, %v132_v15  ;;  %vm136_vm2 = vcmp.gt.f32.partialorder %v132_v15, 0.0 }
  0xdf   :  { %v137_v19 = vmul.f32 0.01, %v127_v17  ;;  %vm135_vm4 = vcmp.gt.f32.partialorder %v127_v17, 0.0 }
  0xe0   :  { %v140_v20 = vsel %vm136_vm2, %v132_v15, %v138_v18 }
  0xe1   :  { %v139_v21 = vsel %vm135_vm4, %v127_v17, %v137_v19 }
  0xe2   :  { %v486_v22 = vpack.c.bf16 %v140_v20, %v139_v21 }
  0xe4   :  { %488 = vmatprep.subr.msk.bf16.mxu1 %vm487_vm6, %v486_v22 }
  0xe5   :  { %491 = vmatpush3.bf16.msk.msra.mxu1 %vm487_vm6, %v486_v22 }
  0xe6   :  { %481 = vmatprep.subr.mxu1 %v532_v25 }
  0xe8   :  { %472 = vmatmul.mubr.msk.f32.vlgmr.msra.gmra.mrb[0].mxu1 %vm155_vm1, %v142_v23 }
  0xe9   :  { %483 = vmatprep.mubr.msk.f32.mxu1 %vm531_vm7, %v532_v25 }
 0x1bb   :  { %v473_v28 = vpop.f32.mrb[0].mxu1 }
 0x1bc   :  { %v238_v29 = vadd.f32 %v473_v28, %v153_v27  ;;  %v232_v30 = vpop.f32.mrb[1].mxu1 }
 0x1bd   :  { %v233_v31 = vadd.f32 %v232_v30, %v148_v26 }
 0x1be   :  { %vm242_vm9 = vcmp.gt.f32.partialorder %v238_v29, 0.0  ;;  %v244_v32 = vmul.f32 0.01, %v238_v29 }
 0x1bf   :  { %vm241_vm10 = vcmp.gt.f32.partialorder %v233_v31, 0.0  ;;  %v243_v33 = vmul.f32 0.01, %v233_v31 }
 0x1c0   :  { %v246_v34 = vsel %vm242_vm9, %v238_v29, %v244_v32 }
 0x1c1   :  { %v245_v35 = vsel %vm241_vm10, %v233_v31, %v243_v33 }
 0x1c2   :  { %v493_v36 = vpack.c.bf16 %v246_v34, %v245_v35 }
 0x1c4   :  { %495 = vmatpush3.bf16.msk.msra.mxu0 %vm494_vm11, %v493_v36 }
 0x1c7   :  { %479 = vmatmul.mubr.msk.f32.vlgmr.msra.gmra.mrb[2].mxu0 %vm254_vm12, %v247_v37 }
 0x29a   :  { %v328_v39 = vpop.f32.mrb[2].mxu0 }
 0x29b   :  { %v329_v40 = vadd.f32 %v328_v39, %v252_v38  ;;  %v480_v41 = vpop.f32.mrb[3].mxu0 }
 0x29d   :  { %vm332_vm13 = vcmp.gt.f32.partialorder %v329_v40, 0.0  ;;  %v333_v42 = vmul.f32 0.01, %v329_v40 }
 0x29f   :  { %v334_v44 = vsel %vm332_vm13, %v329_v40, %v333_v42 }
 0x2a0   :  { %482 = vmatpush3.msk.msra.mxu1 %vm350_vm14, %v334_v44 }
 0x2a1   :  { %484 = vmatmul.mubr.msk.f32.vlgmr.msra.gmra.mrb[2].mxu1 %vm346_vm15, %v335_v43 }
 0x374   :  { %v420_v50 = vpop.f32.mrb[2].mxu1 }
 0x375   :  { %v421_v51 = vadd.f32 %v420_v50, %v345_v49  ;;  %v485_v52 = vpop.f32.mrb[3].mxu1 }
 0x377   :  { %425 = vst.msk [vmem:[#allocation3] sm:$0x1] %vm424_vm0, %v421_v51 }
 0x378   :  { %515 = shalt.err (!%p512_p4)
}
 0x379   :  { %s516_s11 = scalar_lea.hbm %s648_s9, 16 }
 0x37a   :  { %p517_p5 = scmp.ne.s32.totalorder %s648_s9, %s516_s11  ;;  %p520_p6 = scmp.lt.u32.totalorder %s516_s11, %s648_s9 }
 0x37c   :  { %p522_p7 = pnand %p520_p6, %p517_p5 }
 0x37e   :  { %525 = shalt.err (!%p522_p7)
}
 0x37f   :  { %435 = dma.vmem_to_hbm [thread:$0]  %s433_s28, 16, %s648_s9, [#allocation4]  }
 0x380   :  { %526 = dma.done.wait [#allocation4], 16  }
 0x381   :  { %527 = vsyncadd [#allocation4], 4294967280 }
 0x382   :  { %439 = vsyncpa [#allocation4], 1 }

</bundles_post_ra>
